<compile_context>
chip_gen: v5e
topology: v5e:2x2
jax: 0.10.0
libtpu: 0.0.40
codegen_flags: <defaults>
</compile_context>

<pallas_src>
import functools

import jax
import jax.numpy as jnp
from jax.experimental import pallas as pl
from jax.experimental.pallas import tpu as pltpu

FPAD = 128  # lane-dense padded feature width for the MLP head / output


# ---------------------------------------------------------------------------
# Pallas kernel: one grid step == one batch tile of B_TILE samples
# ---------------------------------------------------------------------------
def torque_kernel(img_ref, data_ref, wband_ref, proj_ref, projb_ref,
                  w1_ref, b1_ref, w2_ref, b2_ref, w3_ref, b3_ref, out_ref,
                  *, bt, ho, inv_pool):
    f32 = jnp.float32
    bf16 = jnp.bfloat16

    # --- stem 3x3/s2 conv as ONE implicit-GEMM matmul over the batch tile ---
    # img block is (bt, ho, 3*(W+2)*C) bf16: the three conv-kernel-row phases
    # concatenated on the lane axis.  wband is the vertically-stacked banded
    # weight (3*(W+2)*C, Wo*16).  f32 accumulation on the MXU.
    x = img_ref[...].reshape(bt * ho, -1)
    conv = jnp.dot(x, wband_ref[...], preferred_element_type=f32)

    # --- hardswish (f32 VPU math; v5e has no bf16 VPU) -----------------------
    act = conv * jnp.clip(conv + 3.0, 0.0, 6.0) * (1.0 / 6.0)

    # --- per-sample global average pool: one reduce + f32 mean scale ---------
    colsum = jnp.sum(act.reshape(bt, ho, act.shape[-1]), axis=1) * inv_pool

    # --- projection (pooling matrix folded in) + fused "concat" with data ----
    # proj/projb are zero-padded to 128 lanes; data_ref already carries the
    # dense inputs in lanes [Fc, Fc+Fd), so feat == concat([x1, data], axis=1).
    x1 = jnp.dot(colsum.astype(bf16), proj_ref[...], preferred_element_type=f32)
    feat = x1 + projb_ref[...] + data_ref[...]                       # (bt, 128)

    # --- MLP head: (bt,128)x(128,128) matmuls, relu in f32 -------------------
    h = jnp.dot(feat.astype(bf16), w1_ref[...],
                preferred_element_type=f32) + b1_ref[...]
    h = jnp.maximum(h, 0.0)
    h = jnp.dot(h.astype(bf16), w2_ref[...],
                preferred_element_type=f32) + b2_ref[...]
    h = jnp.maximum(h, 0.0)
    # lane-dense padded output rows; column 0 holds the result
    out_ref[...] = (jnp.dot(h.astype(bf16), w3_ref[...],
                            preferred_element_type=f32) + b3_ref[...])


# ---------------------------------------------------------------------------
# Parameter construction (deterministic, matches module __init__ shapes)
# ---------------------------------------------------------------------------
def init_params(key, out_features_conv, out_features_dense, mid_features,
                n_channels):
    ks = jax.random.split(key, 8)
    scale = 0.1

    # MobileNetV3 stem conv weight (Cout=16, Cin=3, 3, 3), channel-adapted as
    # in get_mobilenet_model.
    stem_w_full = scale * jax.random.normal(ks[0], (16, 3, 3, 3), jnp.float32)
    if n_channels == 1:
        stem_w = jnp.sum(stem_w_full, axis=1, keepdims=True)
    elif n_channels == 2:
        stem_w = stem_w_full[:, :2]
    else:
        stem_w = stem_w_full
    stem_w = jnp.transpose(stem_w, (2, 3, 1, 0))       # (kh, kw, Cin, Cout=16)

    proj_w = scale * jax.random.normal(ks[1], (16, out_features_conv), jnp.float32)
    proj_b = scale * jax.random.normal(ks[2], (1, out_features_conv), jnp.float32)
    f_in = out_features_conv + out_features_dense
    fc1_w = scale * jax.random.normal(ks[3], (f_in, mid_features), jnp.float32)
    fc1_b = scale * jax.random.normal(ks[4], (1, mid_features), jnp.float32)
    fc2_w = scale * jax.random.normal(ks[5], (mid_features, mid_features), jnp.float32)
    fc2_b = scale * jax.random.normal(ks[6], (1, mid_features), jnp.float32)
    fc3_w = scale * jax.random.normal(ks[7], (mid_features, 1), jnp.float32)
    fc3_b = jnp.zeros((1, 1), jnp.float32)

    return dict(stem_w=stem_w, proj_w=proj_w, proj_b=proj_b,
                fc1_w=fc1_w, fc1_b=fc1_b, fc2_w=fc2_w, fc2_b=fc2_b,
                fc3_w=fc3_w, fc3_b=fc3_b)


def prepare_kernel_params(p, image_hw):
    """One-time packing of module weights into kernel-ready constants
    (hoisted out of the per-call wrapper)."""
    h, w = image_hw
    stem_w = p["stem_w"]                         # (3, 3, C, 16)
    c = stem_w.shape[2]
    cout = stem_w.shape[3]
    ho = (h + 2 - 3) // 2 + 1
    wo = (w + 2 - 3) // 2 + 1
    lanes = (w + 2) * c

    # Stacked banded stem-conv weights (3*lanes, Wo*Cout): one vertical band
    # per conv kernel row, so the whole 3x3/s2 conv is a single matmul:
    #   wband[kh*lanes + (2*j+kw)*C + ci, j*Cout + co] = stem_w[kh, kw, ci, co]
    wband = jnp.zeros((3 * lanes, wo * cout), jnp.float32)
    for kh in range(3):
        for kw in range(3):
            for j in range(wo):
                r0 = kh * lanes + (2 * j + kw) * c
                wband = wband.at[r0:r0 + c, j * cout:(j + 1) * cout].set(
                    stem_w[kh, kw])
    wband = wband.astype(jnp.bfloat16)

    fc = p["proj_w"].shape[1]
    fd = p["fc1_w"].shape[0] - fc
    mid = p["fc2_w"].shape[0]
    assert fc + fd <= FPAD and mid <= FPAD

    def padw(wt, rows, cols):      # zero-pad to lane-dense 128-wide tiles
        return (jnp.zeros((rows, cols), jnp.float32)
                .at[:wt.shape[0], :wt.shape[1]].set(wt))

    # Pooling folded into the projection: x1 = (colsum/(Ho*Wo)) @ tile(proj_w).
    # The 1/(Ho*Wo) mean scale is applied in f32 inside the kernel, before the
    # bf16 cast, so pooled values are not double-quantized.
    projw_pad = padw(p["proj_w"], cout, FPAD)
    proj = jnp.tile(projw_pad, (wo, 1)).astype(jnp.bfloat16)   # (Wo*Cout, 128)
    projb = padw(p["proj_b"], 1, FPAD)

    w1 = padw(p["fc1_w"], FPAD, FPAD).astype(jnp.bfloat16)
    b1 = padw(p["fc1_b"], 1, FPAD)
    w2 = padw(p["fc2_w"], FPAD, FPAD).astype(jnp.bfloat16)
    b2 = padw(p["fc2_b"], 1, FPAD)
    w3 = padw(p["fc3_w"], FPAD, FPAD).astype(jnp.bfloat16)
    b3 = padw(p["fc3_b"], 1, FPAD)

    return dict(wband=wband, proj=proj, projb=projb,
                w1=w1, b1=b1, w2=w2, b2=b2, w3=w3, b3=b3)


# ---------------------------------------------------------------------------
# Wrapper: layout glue + pallas_call
# ---------------------------------------------------------------------------
@functools.partial(jax.jit, static_argnames=("fc", "b_tile"))
def torque_forward(image_nchw, data, kp, *, fc, b_tile=8):
    b, c, h, w = image_nchw.shape
    ho = (h + 2 - 3) // 2 + 1                    # conv output rows (s=2, p=1)
    wo = (w + 2 - 3) // 2 + 1
    lanes = (w + 2) * c

    # Batch tile: multiple of 8 so the (bt, 128) feature/output blocks satisfy
    # the (8, 128) tiling rule; pad the batch up to a whole number of tiles.
    bt = max(8, ((min(b_tile, b) + 7) // 8) * 8)
    b_pad = ((b + bt - 1) // bt) * bt
    n_steps = b_pad // bt

    # Layout glue only (bf16, ~1.3x image bytes): NCHW -> padded NHWC, flatten
    # (W+2)*C onto lanes, and concatenate the three stride-2 row phases on the
    # lane axis so the kernel gets ONE (bt, ho, 3*lanes) DMA slab per step.
    # No 9x im2col is materialised in HBM.
    xp = jnp.pad(jnp.transpose(image_nchw, (0, 2, 3, 1)),
                 ((0, 0), (1, 1), (1, 1), (0, 0)))
    xp = xp.reshape(b, h + 2, lanes)
    slab = jnp.concatenate([xp[:, 0:2 * ho:2],          # input rows 2*ho   (kh=0)
                            xp[:, 1:2 * ho:2],          # rows 2*ho + 1     (kh=1)
                            xp[:, 2:2 * ho + 2:2]],     # rows 2*ho + 2     (kh=2)
                           axis=-1).astype(jnp.bfloat16)
    slab = jnp.pad(slab, ((0, b_pad - b), (0, 0), (0, 0)))

    fd = data.shape[1]
    data_pad = jnp.zeros((b_pad, FPAD), jnp.float32)
    data_pad = data_pad.at[:b, fc:fc + fd].set(data.astype(jnp.float32))

    weights = (kp["wband"], kp["proj"], kp["projb"], kp["w1"], kp["b1"],
               kp["w2"], kp["b2"], kp["w3"], kp["b3"])

    img_spec = pl.BlockSpec((bt, ho, 3 * lanes), lambda i: (i, 0, 0))
    row_spec = pl.BlockSpec((bt, FPAD), lambda i: (i, 0))

    def resident(arr):
        # Constant-index block: stays VMEM-resident across all grid steps.
        # TODO(synk): single-buffer (pipeline_mode=pl.Buffered(1)) once these
        # grow to real-backbone sizes; irrelevant at toy sizes.
        return pl.BlockSpec(arr.shape, lambda i: (0, 0))

    conv_flops = 2 * ho * (3 * lanes) * kp["wband"].shape[1]
    fc_flops = 2 * FPAD * FPAD * 4               # proj + fc1 + fc2 + fc3
    cost = pl.CostEstimate(
        flops=int(b_pad * (conv_flops + fc_flops)),
        transcendentals=0,
        bytes_accessed=int(slab.size * 2 + data_pad.size * 4
                           + b_pad * FPAD * 4
                           + sum(wt.size * wt.dtype.itemsize for wt in weights)))

    kernel = functools.partial(torque_kernel, bt=bt, ho=ho,
                               inv_pool=1.0 / float(ho * wo))

    out = pl.pallas_call(
        kernel,
        out_shape=jax.ShapeDtypeStruct((b_pad, FPAD), jnp.float32),
        grid=(n_steps,),
        in_specs=[img_spec, row_spec] + [resident(wt) for wt in weights],
        out_specs=row_spec,
        compiler_params=pltpu.CompilerParams(
            dimension_semantics=("parallel",),       # shard steps across TCs
            vmem_limit_bytes=32 * 1024 * 1024),      # raise on v6e for bigger bt
        cost_estimate=cost,
    )(slab, data_pad, *weights)
    return out[:b, :1]                           # lane-dense rows -> (B, 1)


# ---------------------------------------------------------------------------
# Pure-JAX reference (conventional im2col path) for validation.  It bf16-rounds
# the same operands the kernel feeds to the MXU so the two paths differ only by
# accumulation order / pooling quantization.
# ---------------------------------------------------------------------------
def _bf16_round(x):
    return x.astype(jnp.bfloat16).astype(jnp.float32)


def torque_reference(image_nchw, data, p):
    b, c, h, w = image_nchw.shape
    ho = (h + 2 - 3) // 2 + 1
    wo = (w + 2 - 3) // 2 + 1
    xp = _bf16_round(jnp.pad(jnp.transpose(image_nchw, (0, 2, 3, 1)),
                             ((0, 0), (1, 1), (1, 1), (0, 0))))
    cols = []
    for kh in range(3):
        for kw in range(3):
            cols.append(xp[:, kh:kh + 2 * ho:2, kw:kw + 2 * wo:2, :])
    patches = jnp.concatenate(cols, axis=-1).reshape(b * ho * wo, 9 * c)
    stem_w2d = _bf16_round(p["stem_w"]).reshape(9 * c, -1)
    conv = patches @ stem_w2d
    act = conv * jnp.clip(conv + 3.0, 0.0, 6.0) / 6.0
    pooled = jnp.mean(act.reshape(b, ho * wo, -1), axis=1)
    x1 = _bf16_round(pooled) @ _bf16_round(p["proj_w"]) + p["proj_b"]
    x = jnp.concatenate([x1, data], axis=1)
    hdn = jax.nn.relu(_bf16_round(x) @ _bf16_round(p["fc1_w"]) + p["fc1_b"])
    hdn = jax.nn.relu(_bf16_round(hdn) @ _bf16_round(p["fc2_w"]) + p["fc2_b"])
    return _bf16_round(hdn) @ _bf16_round(p["fc3_w"]) + p["fc3_b"]


if __name__ == "__main__":
    B, C_IN, H, W = 16, 2, 16, 16                # grid of 2 steps at B_TILE=8
    OUT_FEATURES_CONV = 32
    OUT_FEATURES_DENSE = 8
    MID_FEATURES = 32

    key = jax.random.PRNGKey(0)
    k_img, k_data, k_par = jax.random.split(key, 3)

    image = jax.random.normal(k_img, (B, C_IN, H, W), jnp.float32)   # NCHW
    data = jax.random.normal(k_data, (B, OUT_FEATURES_DENSE), jnp.float32)

    params = init_params(k_par, OUT_FEATURES_CONV, OUT_FEATURES_DENSE,
                         MID_FEATURES, C_IN)
    kparams = prepare_kernel_params(params, (H, W))

    out = torque_forward(image, data, kparams, fc=OUT_FEATURES_CONV, b_tile=8)
    out = jax.block_until_ready(out)

    ref = torque_reference(image, data, params)
    assert out.shape == (B, 1), out.shape
    assert jnp.allclose(out, ref, atol=5e-3, rtol=5e-3), (out, ref)

    print("KERNEL_OK")
</pallas_src>

<mosaic_0001>
module attributes {stable_mosaic.version = 11 : i64} {
  func.func @torque_kernel(%arg0: i32, %arg1: memref<8x8x108xbf16, #tpu.memory_space<vmem>>, %arg2: memref<8x128xf32, #tpu.memory_space<vmem>>, %arg3: memref<108x128xbf16, #tpu.memory_space<vmem>>, %arg4: memref<128x128xbf16, #tpu.memory_space<vmem>>, %arg5: memref<1x128xf32, #tpu.memory_space<vmem>>, %arg6: memref<128x128xbf16, #tpu.memory_space<vmem>>, %arg7: memref<1x128xf32, #tpu.memory_space<vmem>>, %arg8: memref<128x128xbf16, #tpu.memory_space<vmem>>, %arg9: memref<1x128xf32, #tpu.memory_space<vmem>>, %arg10: memref<128x128xbf16, #tpu.memory_space<vmem>>, %arg11: memref<1x128xf32, #tpu.memory_space<vmem>>, %arg12: memref<8x128xf32, #tpu.memory_space<vmem>>) attributes {dimension_semantics = [#tpu.dimension_semantics<parallel>], iteration_bounds = array<i64: 2>, scalar_prefetch = 0 : i64, scratch_operands = 0 : i64, tpu.core_type = #tpu.core_type<tc>, window_params = [{transform_indices = @transform_0, window_bounds = array<i64: 8, 8, 108>}, {transform_indices = @transform_1, window_bounds = array<i64: 8, 128>}, {pipeline_mode = #tpu.pipeline_mode<synchronous>, transform_indices = @transform_2, window_bounds = array<i64: 108, 128>}, {pipeline_mode = #tpu.pipeline_mode<synchronous>, transform_indices = @transform_3, window_bounds = array<i64: 128, 128>}, {pipeline_mode = #tpu.pipeline_mode<synchronous>, transform_indices = @transform_4, window_bounds = array<i64: 1, 128>}, {pipeline_mode = #tpu.pipeline_mode<synchronous>, transform_indices = @transform_5, window_bounds = array<i64: 128, 128>}, {pipeline_mode = #tpu.pipeline_mode<synchronous>, transform_indices = @transform_6, window_bounds = array<i64: 1, 128>}, {pipeline_mode = #tpu.pipeline_mode<synchronous>, transform_indices = @transform_7, window_bounds = array<i64: 128, 128>}, {pipeline_mode = #tpu.pipeline_mode<synchronous>, transform_indices = @transform_8, window_bounds = array<i64: 1, 128>}, {pipeline_mode = #tpu.pipeline_mode<synchronous>, transform_indices = @transform_9, window_bounds = array<i64: 128, 128>}, {pipeline_mode = #tpu.pipeline_mode<synchronous>, transform_indices = @transform_10, window_bounds = array<i64: 1, 128>}, {transform_indices = @transform_11, window_bounds = array<i64: 8, 128>}]} {
    %c0 = arith.constant 0 : index
    %c0_0 = arith.constant 0 : index
    %c0_1 = arith.constant 0 : index
    %0 = vector.load %arg1[%c0, %c0_0, %c0_1] : memref<8x8x108xbf16, #tpu.memory_space<vmem>>, vector<8x8x108xbf16>
    %1 = vector.shape_cast %0 : vector<8x8x108xbf16> to vector<64x108xbf16>
    %c0_2 = arith.constant 0 : index
    %c0_3 = arith.constant 0 : index
    %2 = vector.load %arg3[%c0_2, %c0_3] : memref<108x128xbf16, #tpu.memory_space<vmem>>, vector<108x128xbf16>
    %cst = arith.constant dense<0.000000e+00> : vector<64x128xf32>
    %3 = tpu.matmul %1, %2, %cst {dimension_numbers = #tpu.dot_dimension_numbers<[1], [0], [0], [1], [0, 0, 1, 1], [], []>} : vector<64x108xbf16>, vector<108x128xbf16>, vector<64x128xf32> -> vector<64x128xf32>
    %cst_4 = arith.constant 3.000000e+00 : f32
    %4 = vector.broadcast %cst_4 : f32 to vector<64x128xf32>
    %5 = arith.addf %3, %4 : vector<64x128xf32>
    %cst_5 = arith.constant 0.000000e+00 : f32
    %cst_6 = arith.constant 6.000000e+00 : f32
    %6 = vector.broadcast %cst_5 : f32 to vector<64x128xf32>
    %7 = arith.maximumf %6, %5 : vector<64x128xf32>
    %8 = vector.broadcast %cst_6 : f32 to vector<64x128xf32>
    %9 = arith.minimumf %8, %7 : vector<64x128xf32>
    %10 = arith.mulf %3, %9 : vector<64x128xf32>
    %cst_7 = arith.constant 0.166666672 : f32
    %11 = vector.broadcast %cst_7 : f32 to vector<64x128xf32>
    %12 = arith.mulf %10, %11 : vector<64x128xf32>
    %13 = vector.shape_cast %12 : vector<64x128xf32> to vector<8x8x128xf32>
    %cst_8 = arith.constant dense<0.000000e+00> : vector<8x128xf32>
    %14 = vector.multi_reduction <add>, %13, %cst_8 [1] : vector<8x8x128xf32> to vector<8x128xf32>
    %cst_9 = arith.constant 1.562500e-02 : f32
    %15 = vector.broadcast %cst_9 : f32 to vector<8x128xf32>
    %16 = arith.mulf %14, %15 : vector<8x128xf32>
    %17 = arith.truncf %16 : vector<8x128xf32> to vector<8x128xbf16>
    %c0_10 = arith.constant 0 : index
    %c0_11 = arith.constant 0 : index
    %18 = vector.load %arg4[%c0_10, %c0_11] : memref<128x128xbf16, #tpu.memory_space<vmem>>, vector<128x128xbf16>
    %cst_12 = arith.constant dense<0.000000e+00> : vector<8x128xf32>
    %19 = tpu.matmul %17, %18, %cst_12 {dimension_numbers = #tpu.dot_dimension_numbers<[1], [0], [0], [1], [0, 0, 1, 1], [], []>} : vector<8x128xbf16>, vector<128x128xbf16>, vector<8x128xf32> -> vector<8x128xf32>
    %c0_13 = arith.constant 0 : index
    %c0_14 = arith.constant 0 : index
    %20 = vector.load %arg5[%c0_13, %c0_14] : memref<1x128xf32, #tpu.memory_space<vmem>>, vector<1x128xf32>
    %21 = vector.broadcast %20 : vector<1x128xf32> to vector<8x128xf32>
    %22 = arith.addf %19, %21 : vector<8x128xf32>
    %c0_15 = arith.constant 0 : index
    %c0_16 = arith.constant 0 : index
    %23 = vector.load %arg2[%c0_15, %c0_16] : memref<8x128xf32, #tpu.memory_space<vmem>>, vector<8x128xf32>
    %24 = arith.addf %22, %23 : vector<8x128xf32>
    %25 = arith.truncf %24 : vector<8x128xf32> to vector<8x128xbf16>
    %c0_17 = arith.constant 0 : index
    %c0_18 = arith.constant 0 : index
    %26 = vector.load %arg6[%c0_17, %c0_18] : memref<128x128xbf16, #tpu.memory_space<vmem>>, vector<128x128xbf16>
    %cst_19 = arith.constant dense<0.000000e+00> : vector<8x128xf32>
    %27 = tpu.matmul %25, %26, %cst_19 {dimension_numbers = #tpu.dot_dimension_numbers<[1], [0], [0], [1], [0, 0, 1, 1], [], []>} : vector<8x128xbf16>, vector<128x128xbf16>, vector<8x128xf32> -> vector<8x128xf32>
    %c0_20 = arith.constant 0 : index
    %c0_21 = arith.constant 0 : index
    %28 = vector.load %arg7[%c0_20, %c0_21] : memref<1x128xf32, #tpu.memory_space<vmem>>, vector<1x128xf32>
    %29 = vector.broadcast %28 : vector<1x128xf32> to vector<8x128xf32>
    %30 = arith.addf %27, %29 : vector<8x128xf32>
    %cst_22 = arith.constant 0.000000e+00 : f32
    %31 = vector.broadcast %cst_22 : f32 to vector<8x128xf32>
    %32 = arith.maximumf %30, %31 : vector<8x128xf32>
    %33 = arith.truncf %32 : vector<8x128xf32> to vector<8x128xbf16>
    %c0_23 = arith.constant 0 : index
    %c0_24 = arith.constant 0 : index
    %34 = vector.load %arg8[%c0_23, %c0_24] : memref<128x128xbf16, #tpu.memory_space<vmem>>, vector<128x128xbf16>
    %cst_25 = arith.constant dense<0.000000e+00> : vector<8x128xf32>
    %35 = tpu.matmul %33, %34, %cst_25 {dimension_numbers = #tpu.dot_dimension_numbers<[1], [0], [0], [1], [0, 0, 1, 1], [], []>} : vector<8x128xbf16>, vector<128x128xbf16>, vector<8x128xf32> -> vector<8x128xf32>
    %c0_26 = arith.constant 0 : index
    %c0_27 = arith.constant 0 : index
    %36 = vector.load %arg9[%c0_26, %c0_27] : memref<1x128xf32, #tpu.memory_space<vmem>>, vector<1x128xf32>
    %37 = vector.broadcast %36 : vector<1x128xf32> to vector<8x128xf32>
    %38 = arith.addf %35, %37 : vector<8x128xf32>
    %cst_28 = arith.constant 0.000000e+00 : f32
    %39 = vector.broadcast %cst_28 : f32 to vector<8x128xf32>
    %40 = arith.maximumf %38, %39 : vector<8x128xf32>
    %41 = arith.truncf %40 : vector<8x128xf32> to vector<8x128xbf16>
    %c0_29 = arith.constant 0 : index
    %c0_30 = arith.constant 0 : index
    %42 = vector.load %arg10[%c0_29, %c0_30] : memref<128x128xbf16, #tpu.memory_space<vmem>>, vector<128x128xbf16>
    %cst_31 = arith.constant dense<0.000000e+00> : vector<8x128xf32>
    %43 = tpu.matmul %41, %42, %cst_31 {dimension_numbers = #tpu.dot_dimension_numbers<[1], [0], [0], [1], [0, 0, 1, 1], [], []>} : vector<8x128xbf16>, vector<128x128xbf16>, vector<8x128xf32> -> vector<8x128xf32>
    %c0_32 = arith.constant 0 : index
    %c0_33 = arith.constant 0 : index
    %44 = vector.load %arg11[%c0_32, %c0_33] : memref<1x128xf32, #tpu.memory_space<vmem>>, vector<1x128xf32>
    %45 = vector.broadcast %44 : vector<1x128xf32> to vector<8x128xf32>
    %46 = arith.addf %43, %45 : vector<8x128xf32>
    %c0_34 = arith.constant 0 : index
    %c0_35 = arith.constant 0 : index
    %47 = vector.load %arg12[%c0_34, %c0_35] : memref<8x128xf32, #tpu.memory_space<vmem>>, vector<8x128xf32>
    tpu.vector_store %arg12[%c0_34, %c0_35], %46 {strides = array<i32>} : memref<8x128xf32, #tpu.memory_space<vmem>>, vector<8x128xf32>,
    return
  }
  func.func @transform_0(%arg0: i32) -> (i32, i32, i32) {
    %c0_i32 = arith.constant 0 : i32
    %c0_i32_0 = arith.constant 0 : i32
    %c0_i32_1 = arith.constant 0 : i32
    return %arg0, %c0_i32, %c0_i32_0 : i32, i32, i32
  }
  func.func @transform_1(%arg0: i32) -> (i32, i32) {
    %c0_i32 = arith.constant 0 : i32
    %c0_i32_0 = arith.constant 0 : i32
    return %arg0, %c0_i32 : i32, i32
  }
  func.func @transform_2(%arg0: i32) -> (i32, i32) {
    %c0_i32 = arith.constant 0 : i32
    %c0_i32_0 = arith.constant 0 : i32
    %c0_i32_1 = arith.constant 0 : i32
    return %c0_i32, %c0_i32_0 : i32, i32
  }
  func.func @transform_3(%arg0: i32) -> (i32, i32) {
    %c0_i32 = arith.constant 0 : i32
    %c0_i32_0 = arith.constant 0 : i32
    %c0_i32_1 = arith.constant 0 : i32
    return %c0_i32, %c0_i32_0 : i32, i32
  }
  func.func @transform_4(%arg0: i32) -> (i32, i32) {
    %c0_i32 = arith.constant 0 : i32
    %c0_i32_0 = arith.constant 0 : i32
    %c0_i32_1 = arith.constant 0 : i32
    return %c0_i32, %c0_i32_0 : i32, i32
  }
  func.func @transform_5(%arg0: i32) -> (i32, i32) {
    %c0_i32 = arith.constant 0 : i32
    %c0_i32_0 = arith.constant 0 : i32
    %c0_i32_1 = arith.constant 0 : i32
    return %c0_i32, %c0_i32_0 : i32, i32
  }
  func.func @transform_6(%arg0: i32) -> (i32, i32) {
    %c0_i32 = arith.constant 0 : i32
    %c0_i32_0 = arith.constant 0 : i32
    %c0_i32_1 = arith.constant 0 : i32
    return %c0_i32, %c0_i32_0 : i32, i32
  }
  func.func @transform_7(%arg0: i32) -> (i32, i32) {
    %c0_i32 = arith.constant 0 : i32
    %c0_i32_0 = arith.constant 0 : i32
    %c0_i32_1 = arith.constant 0 : i32
    return %c0_i32, %c0_i32_0 : i32, i32
  }
  func.func @transform_8(%arg0: i32) -> (i32, i32) {
    %c0_i32 = arith.constant 0 : i32
    %c0_i32_0 = arith.constant 0 : i32
    %c0_i32_1 = arith.constant 0 : i32
    return %c0_i32, %c0_i32_0 : i32, i32
  }
  func.func @transform_9(%arg0: i32) -> (i32, i32) {
    %c0_i32 = arith.constant 0 : i32
    %c0_i32_0 = arith.constant 0 : i32
    %c0_i32_1 = arith.constant 0 : i32
    return %c0_i32, %c0_i32_0 : i32, i32
  }
  func.func @transform_10(%arg0: i32) -> (i32, i32) {
    %c0_i32 = arith.constant 0 : i32
    %c0_i32_0 = arith.constant 0 : i32
    %c0_i32_1 = arith.constant 0 : i32
    return %c0_i32, %c0_i32_0 : i32, i32
  }
  func.func @transform_11(%arg0: i32) -> (i32, i32) {
    %c0_i32 = arith.constant 0 : i32
    %c0_i32_0 = arith.constant 0 : i32
    return %arg0, %c0_i32 : i32, i32
  }
}

</mosaic_0001>

<bundles_post_ra>
// kernel: torque_forward.1
= control target key start
LH: loop header
LB: loop body
LE: loop exit
PB: predicated region body
PF: predicated region fallthrough
CT: control target
= control target key end

     0   :  { %s1377_s17 = smov 0   ;;  %s1541_s0 = inlined_call_operand.vmem [shape: bf16[16,8,108], index: 0, kind: input, shape index: {}]   ;;  %s1542_s1 = inlined_call_operand.vmem [shape: f32[16,128], index: 1, kind: input, shape index: {}]   ;;  %s1543_s2 = inlined_call_operand.vmem [shape: bf16[108,128], index: 2, kind: input, shape index: {}]   ;;  %s1544_s3 = inlined_call_operand.vmem [shape: bf16[128,128], index: 3, kind: input, shape index: {}]   ;;  %s1545_s4 = inlined_call_operand.vmem [shape: f32[1,128], index: 4, kind: input, shape index: {}]   ;;  %s1546_s5 = inlined_call_operand.vmem [shape: bf16[128,128], index: 5, kind: input, shape index: {}]   ;;  %s1547_s6 = inlined_call_operand.vmem [shape: f32[1,128], index: 6, kind: input, shape index: {}]   ;;  %s1548_s7 = inlined_call_operand.vmem [shape: bf16[128,128], index: 7, kind: input, shape index: {}]   ;;  %s1549_s8 = inlined_call_operand.vmem [shape: f32[1,128], index: 8, kind: input, shape index: {}]   ;;  %s1550_s9 = inlined_call_operand.vmem [shape: bf16[128,128], index: 9, kind: input, shape index: {}]   ;;  %s1551_s10 = inlined_call_operand.vmem [shape: f32[1,128], index: 10, kind: input, shape index: {}]   ;;  %s1552_s11 = inlined_call_operand.vmem [shape: f32[16,128], index: 11, kind: output, shape index: {}]  }
   0x1 LB: > { %s1383_s18 = sadd.s32 4294967295, %s1315_s17   ;;  %p1071_p0 = scmp.ge.s32.totalorder %s1315_s17, 1  ;;  %s1315_s17 = sphi %s1377_s17, %s21_s17  }
   0x2   : > { %p347_p1 = scmp.lt.s32.totalorder %s1315_s17, 3 }
   0x4   : > { %p348_p2 = pnand %p1071_p0, %p347_p1 }
   0x5   : > { %s1072_s27 = sshll.u32 (!%p348_p2), %s1383_s18, 3  ;;  %p396_p4 = scmp.lt.s32.totalorder (!%p348_p2), %s1383_s18, 1 }
   0x6   : > { %351 = sbr.rel (%p348_p2) target bundleno = 797 (0x31d), region = 64  ;;  %p391_p3 = scmp.lt.s32.totalorder (!%p348_p2), %s1072_s27, 15 }
   0xb   : > { %v1118_v0 = vld [vmem:[%s1543_s2 + $0x30] sm:$0xf]  ;;  %v1264_v1 = vld [vmem:[%s1543_s2 + $0x30] sm:$0x30]  ;;  %vm501_vm0 = vcmask 1045504   ;;  %v1263_v4 = vld [vmem:[%s1543_s2 + $0x28] sm:$0xff] }
   0xc   : > { %v1119_v2 = vor.u32 %v1264_v1, %v1118_v0  ;;  %v1262_v5 = vld [vmem:[%s1543_s2 + $0x20] sm:$0xff]  ;;  %v1261_v6 = vld [vmem:[%s1543_s2 + $0x18] sm:$0xff]  ;;  %v1260_v7 = vld [vmem:[%s1543_s2 + $0x10] sm:$0xff]  ;;  %s1554_s27 = smov (!%p391_p3, %s1072_s27), 15  ;;  %vm488_vm1 = vcmask 883712   ;;  %vm674_vm2 = vcmask 1041409  }
   0xd   : > { %v1259_v8 = vld [vmem:[%s1543_s2 + $0x8] sm:$0xff]  ;;  %s1073_s15 = sshll.u32 %s1554_s27, 2  ;;  %v1258_v9 = vld [vmem:[%s1543_s2] sm:$0xff]  ;;  %v1272_v18 = vld [vmem:[%s1544_s3 + $0x38] sm:$0xff]  ;;  %vm676_vm3 = vcmask 1042434   ;;  %vm678_vm4 = vcmask 1043459  }
   0xe   : > { %v503_v3 = vsel %vm501_vm0, %v1119_v2, 0  ;;  %s394_s22 = scalar_lea.vmem %s1541_s0, %s1073_s15  ;;  %738 = vmatpush.bf16.msra.mxu1 %v1272_v18  ;;  %v1271_v24 = vld [vmem:[%s1544_s3 + $0x30] sm:$0xff]  ;;  %v1270_v29 = vld [vmem:[%s1544_s3 + $0x28] sm:$0xff]  ;;  %v1269_v37 = vld [vmem:[%s1544_s3 + $0x20] sm:$0xff]  ;;  %vm680_vm5 = vcmask 1044484   ;;  %vm682_vm6 = vcmask 1045509  }
   0xf   : > { %506 = vmatpush.bf16.msra.mxu0 %v503_v3  ;;  %v1254_v10 = vld [vmem:[%s394_s22] sm:$0xff]  ;;  %v1255_v11 = vld [vmem:[%s394_s22 + $0x8] sm:$0xff]  ;;  %v1256_v12 = vld [vmem:[%s394_s22 + $0x10] sm:$0xff]  ;;  %vm684_vm7 = vcmask 1046534   ;;  %vm686_vm8 = vcmask 1047559   ;;  %s1556_s18 = smov (!%p396_p4, %s1383_s18), 1 }
  0x10   : > { %v1257_v13 = vld [vmem:[%s394_s22 + $0x18] sm:$0xff]  ;;  %v1267_v53 = vld [vmem:[%s1544_s3 + $0x10] sm:$0xff]  ;;  %v1266_v58 = vld [vmem:[%s1544_s3 + $0x8] sm:$0xff]  ;;  %s1074_s12 = sshll.u32 %s1556_s18, 3 }
  0x11   : > { %v1268_v44 = vld [vmem:[%s1544_s3 + $0x18] sm:$0xff]  ;;  %s399_s21 = scalar_lea.vmem %s1542_s1, %s1074_s12  ;;  %s403_s16 = scalar_lea.vmem %s1552_s11, %s1074_s12 }
  0x12   : > { %739 = vmatpush.bf16.msra.mxu1 %v1271_v24 }
  0x13   : > { %507 = vmatpush.bf16.msra.mxu0 %v1263_v4  ;;  %v1265_v4 = vld [vmem:[%s1544_s3] sm:$0xff] }
  0x16   : > { %740 = vmatpush.bf16.msra.mxu1 %v1270_v29 }
  0x17   : > { %508 = vmatpush.bf16.msra.mxu0 %v1262_v5 }
  0x1a   : > { %741 = vmatpush.bf16.msra.mxu1 %v1269_v37  ;;  %v1278_v37 = vld [vmem:[%s1546_s5 + $0x28] sm:$0xff] }
  0x1b   : > { %509 = vmatpush.bf16.msra.mxu0 %v1261_v6 }
  0x1e   : > { %742 = vmatpush.bf16.msra.mxu1 %v1268_v44 }
  0x1f   : > { %510 = vmatpush.bf16.msra.mxu0 %v1260_v7 }
  0x22   : > { %743 = vmatpush.bf16.msra.mxu1 %v1267_v53 }
  0x23   : > { %511 = vmatpush.bf16.msra.mxu0 %v1259_v8 }
  0x26   : > { %744 = vmatpush.bf16.msra.mxu1 %v1266_v58 }
  0x27   : > { %512 = vmatpush.bf16.msra.mxu0 %v1258_v9 }
  0x2a   : > { %1120 = vmatmul.msk.bf16.vlgmr.msra.gmra.mxu0 %vm488_vm1, %v1254_v10  ;;  %745 = vmatpush.bf16.msra.mxu1 %v1265_v4 }
  0x3a   : > { %1121 = vmatmul.msk.bf16.gmra.mxu0 %vm488_vm1, %v1255_v11 }
  0x4a   : > { %1122 = vmatmul.msk.bf16.gmra.mxu0 %vm488_vm1, %v1256_v12 }
  0x5a   : > { %1123 = vmatmul.msk.bf16.gmra.mxu0 %vm488_vm1, %v1257_v13 }
  0xa7   : > { %v514_v14 = vpop.f32.mrf.mxu0 }
  0xa8   : > { %v534_v21 = vadd.f32 3.0, %v514_v14 }
  0xaa   : > { %v542_v26 = vmax.f32 %v534_v21, 0.0 }
  0xac   : > { %v550_v32 = vmin.f32 %v542_v26, 6.0  ;;  %v1279_v26 = vld [vmem:[%s1546_s5 + $0x30] sm:$0xff] }
  0xae   : > { %v558_v39 = vmul.f32 %v550_v32, %v514_v14 }
  0xaf   : > { %v516_v15 = vpop.f32.mrf.mxu0 }
  0xb0   : > { %v535_v17 = vadd.f32 3.0, %v516_v15  ;;  %v566_v47 = vmul.f32 0.16666667, %v558_v39 }
  0xb2   : > { %v543_v23 = vmax.f32 %v535_v17, 0.0  ;;  %v574_v55 = vrot.slane %v566_v47, 4 }
  0xb4   : > { %v551_v28 = vmin.f32 %v543_v23, 6.0  ;;  %v575_v0 = vadd.f32 %v574_v55, %v566_v47 }
  0xb6   : > { %v559_v35 = vmul.f32 %v551_v28, %v516_v15  ;;  %v576_v10 = vrot.slane %v575_v0, 2 }
  0xb7   : > { %v519_v16 = vpop.f32.mrf.mxu0 }
  0xb8   : > { %v536_v19 = vadd.f32 3.0, %v519_v16  ;;  %v567_v42 = vmul.f32 0.16666667, %v559_v35  ;;  %v577_v21 = vadd.f32 %v576_v10, %v575_v0 }
  0xba   : > { %v544_v25 = vmax.f32 %v536_v19, 0.0  ;;  %v580_v51 = vrot.slane %v567_v42, 4  ;;  %v578_v32 = vrot.slane %v577_v21, 1 }
  0xbc   : > { %v552_v30 = vmin.f32 %v544_v25, 6.0  ;;  %v581_v60 = vadd.f32 %v580_v51, %v567_v42 }
  0xbe   : > { %v560_v38 = vmul.f32 %v552_v30, %v519_v16  ;;  %v582_v6 = vrot.slane %v581_v60, 2 }
  0xbf   : > { %v521_v20 = vpop.f32.mrf.mxu0 }
  0xc0   : > { %v537_v22 = vadd.f32 3.0, %v521_v20  ;;  %v568_v45 = vmul.f32 0.16666667, %v560_v38  ;;  %v583_v15 = vadd.f32 %v582_v6, %v581_v60 }
  0xc2   : > { %v545_v27 = vmax.f32 %v537_v22, 0.0  ;;  %v586_v54 = vrot.slane %v568_v45, 4 }
  0xc4   : > { %v553_v33 = vmin.f32 %v545_v27, 6.0  ;;  %v587_v62 = vadd.f32 %v586_v54, %v568_v45  ;;  %v584_v27 = vrot.slane %v583_v15, 1 }
  0xc6   : > { %v561_v40 = vmul.f32 %v553_v33, %v521_v20  ;;  %v588_v9 = vrot.slane %v587_v62, 2  ;;  %v1280_v20 = vld [vmem:[%s1546_s5 + $0x38] sm:$0xff]  ;;  %v585_v38 = vadd.f32 %v584_v27, %v583_v15 }
  0xc7   : > { %v524_v31 = vpop.f32.mrf.mxu0  ;;  %822 = vmatpush.bf16.msra.mxu2 %v1280_v20 }
  0xc8   : > { %v538_v34 = vadd.f32 3.0, %v524_v31  ;;  %v569_v48 = vmul.f32 0.16666667, %v561_v40  ;;  %v589_v18 = vadd.f32 %v588_v9, %v587_v62 }
  0xca   : > { %v546_v36 = vmax.f32 %v538_v34, 0.0  ;;  %v592_v56 = vrot.slane %v569_v48, 4 }
  0xcb   : > { %823 = vmatpush.bf16.msra.mxu2 %v1279_v26 }
  0xcc   : > { %v554_v41 = vmin.f32 %v546_v36, 6.0  ;;  %v593_v1 = vadd.f32 %v592_v56, %v569_v48  ;;  %v1277_v48 = vld [vmem:[%s1546_s5 + $0x20] sm:$0xff] }
  0xce   : > { %v562_v43 = vmul.f32 %v554_v41, %v524_v31  ;;  %v594_v11 = vrot.slane %v593_v1, 2  ;;  %v590_v31 = vrot.slane %v589_v18, 1 }
  0xcf   : > { %v526_v46 = vpop.f32.mrf.mxu0  ;;  %824 = vmatpush.bf16.msra.mxu2 %v1278_v37 }
  0xd0   : > { %v539_v49 = vadd.f32 3.0, %v526_v46  ;;  %v570_v50 = vmul.f32 0.16666667, %v562_v43  ;;  %v595_v22 = vadd.f32 %v594_v11, %v593_v1  ;;  %v591_v42 = vadd.f32 %v590_v31, %v589_v18  ;;  %v1287_v31 = vld [vmem:[%s1548_s7 + $0x30] sm:$0xff] }
  0xd1   : > { %v579_v43 = vadd.f32 %v578_v32, %v577_v21  ;;  %v1286_v32 = vld [vmem:[%s1548_s7 + $0x28] sm:$0xff] }
  0xd2   : > { %v547_v52 = vmax.f32 %v539_v49, 0.0  ;;  %v598_v59 = vrot.slane %v570_v50, 4  ;;  %v596_v33 = vrot.slane %v595_v22, 1  ;;  %v623_v49 = vmul.f32 0.015625, %v585_v38  ;;  %v751_v38 = vld [vmem:[%s399_s21] sm:$0xff] }
  0xd3   : > { %v624_v53 = vmul.f32 0.015625, %v591_v42  ;;  %v622_v54 = vmul.f32 0.015625, %v579_v43  ;;  %825 = vmatpush.bf16.msra.mxu2 %v1277_v48  ;;  %v1282_v43 = vld [vmem:[%s1548_s7 + $0x8] sm:$0xff]  ;;  %v1293_v48 = vld [vmem:[%s1550_s9 + $0x20] sm:$0xff] }
  0xd4   : > { %v555_v57 = vmin.f32 %v547_v52, 6.0  ;;  %v599_v5 = vadd.f32 %v598_v59, %v570_v50  ;;  %v597_v44 = vadd.f32 %v596_v33, %v595_v22  ;;  %v1276_v59 = vld [vmem:[%s1546_s5 + $0x18] sm:$0xff]  ;;  %v631_v60 = vpack.c.bf16 %v623_v49, %v623_v49  ;;  %v1285_v33 = vld [vmem:[%s1548_s7 + $0x20] sm:$0xff] }
  0xd5   : > { %v630_v1 = vpack.c.bf16 %v622_v54, %v622_v54  ;;  %v1292_v49 = vld [vmem:[%s1550_s9 + $0x18] sm:$0xff] }
  0xd6   : > { %v563_v61 = vmul.f32 %v555_v57, %v526_v46  ;;  %v600_v14 = vrot.slane %v599_v5, 2  ;;  %v625_v55 = vmul.f32 0.015625, %v597_v44  ;;  %v667_v6 = vunpack.c.l.b16 %v631_v60  ;;  %v1281_v44 = vld [vmem:[%s1548_s7] sm:$0xff] }
  0xd7   : > { %v529_v63 = vpop.f32.mrf.mxu0  ;;  %826 = vmatpush.bf16.msra.mxu2 %v1276_v59  ;;  %v666_v11 = vunpack.c.l.b16 %v630_v1  ;;  %v1307_v59 = vld [vmem:[%s1549_s8] ss:$0 sm:$0xff] }
  0xd8   : > { %v571_v2 = vmul.f32 0.16666667, %v563_v61  ;;  %v540_v3 = vadd.f32 3.0, %v529_v63  ;;  %v601_v25 = vadd.f32 %v600_v14, %v599_v5  ;;  %v1275_v5 = vld [vmem:[%s1546_s5 + $0x10] sm:$0xff]  ;;  %v1308_v1 = vld [vmem:[%s1551_s10] ss:$0 sm:$0xff] }
  0xd9   : > { %v675_v15 = vsel %vm674_vm2, %v667_v6, %v666_v11 }
  0xda   : > { %v604_v7 = vrot.slane %v571_v2, 4  ;;  %v548_v8 = vmax.f32 %v540_v3, 0.0  ;;  %v602_v36 = vrot.slane %v601_v25, 1 }
  0xdb   : > { %827 = vmatpush.bf16.msra.mxu2 %v1275_v5 }
  0xdc   : > { %v605_v12 = vadd.f32 %v604_v7, %v571_v2  ;;  %v556_v13 = vmin.f32 %v548_v8, 6.0  ;;  %v603_v47 = vadd.f32 %v602_v36, %v601_v25  ;;  %v633_v2 = vpack.c.bf16 %v625_v55, %v625_v55  ;;  %v1305_v36 = vld [vmem:[%s1545_s4] ss:$0 sm:$0xff] }
  0xde   : > { %v606_v16 = vrot.slane %v605_v12, 2  ;;  %v564_v17 = vmul.f32 %v556_v13, %v529_v63  ;;  %v626_v58 = vmul.f32 0.015625, %v603_v47  ;;  %v632_v63 = vpack.c.bf16 %v624_v53, %v624_v53  ;;  %v1294_v47 = vld [vmem:[%s1550_s9 + $0x28] sm:$0xff] }
  0xdf   : > { %v531_v19 = vpop.f32.mrf.mxu0 }
  0xe0   : > { %v572_v23 = vmul.f32 0.16666667, %v564_v17  ;;  %v541_v24 = vadd.f32 3.0, %v531_v19  ;;  %v607_v28 = vadd.f32 %v606_v16, %v605_v12  ;;  %v634_v4 = vpack.c.bf16 %v626_v58, %v626_v58  ;;  %v1289_v58 = vld [vmem:[%s1550_s9] sm:$0xff] }
  0xe1   : > { %v668_v9 = vunpack.c.l.b16 %v632_v63  ;;  %v669_v12 = vunpack.c.l.b16 %v633_v2 }
  0xe2   : > { %v610_v29 = vrot.slane %v572_v23, 4  ;;  %v549_v30 = vmax.f32 %v541_v24, 0.0  ;;  %v608_v39 = vrot.slane %v607_v28, 1  ;;  %v670_v14 = vunpack.c.l.b16 %v634_v4 }
  0xe4   : > { %v611_v34 = vadd.f32 %v610_v29, %v572_v23  ;;  %v557_v35 = vmin.f32 %v549_v30, 6.0  ;;  %v609_v50 = vadd.f32 %v608_v39, %v607_v28  ;;  %v1274_v28 = vld [vmem:[%s1546_s5 + $0x8] sm:$0xff]  ;;  %v1273_v29 = vld [vmem:[%s1546_s5] sm:$0xff]  ;;  %v1288_v30 = vld [vmem:[%s1548_s7 + $0x38] sm:$0xff] }
  0xe5   : > { %828 = vmatpush.bf16.msra.mxu2 %v1274_v28  ;;  %905 = vmatpush.bf16.msra.mxu3 %v1288_v30 }
  0xe6   : > { %v612_v40 = vrot.slane %v611_v34, 2  ;;  %v565_v41 = vmul.f32 %v557_v35, %v531_v19  ;;  %v627_v61 = vmul.f32 0.015625, %v609_v50  ;;  %v677_v19 = vsel %vm676_vm3, %v668_v9, %v675_v15  ;;  %v1283_v35 = vld [vmem:[%s1548_s7 + $0x10] sm:$0xff] }
  0xe7   : > { %v679_v21 = vsel %vm678_vm4, %v669_v12, %v677_v19  ;;  %v1291_v50 = vld [vmem:[%s1550_s9 + $0x10] sm:$0xff] }
  0xe8   : > { %v613_v45 = vadd.f32 %v612_v40, %v611_v34  ;;  %v573_v46 = vmul.f32 0.16666667, %v565_v41  ;;  %v635_v7 = vpack.c.bf16 %v627_v61, %v627_v61  ;;  %v681_v22 = vsel %vm680_vm5, %v670_v14, %v679_v21  ;;  %v1284_v34 = vld [vmem:[%s1548_s7 + $0x18] sm:$0xff] }
  0xe9   : > { %829 = vmatpush.bf16.msra.mxu2 %v1273_v29  ;;  %906 = vmatpush.bf16.msra.mxu3 %v1287_v31 }
  0xea   : > { %v614_v51 = vrot.slane %v613_v45, 1  ;;  %v616_v52 = vrot.slane %v573_v46, 4  ;;  %v671_v16 = vunpack.c.l.b16 %v635_v7 }
  0xec   : > { %v615_v56 = vadd.f32 %v614_v51, %v613_v45  ;;  %v617_v57 = vadd.f32 %v616_v52, %v573_v46  ;;  %v683_v24 = vsel %vm682_vm6, %v671_v16, %v681_v22  ;;  %v1296_v45 = vld [vmem:[%s1550_s9 + $0x38] sm:$0xff]  ;;  %v1295_v46 = vld [vmem:[%s1550_s9 + $0x30] sm:$0xff]  ;;  %v1306_v51 = vld [vmem:[%s1547_s6] ss:$0 sm:$0xff] }
  0xed   : > { %907 = vmatpush.bf16.msra.mxu3 %v1286_v32  ;;  %988 = vmatpush.bf16.msrb.mxu1 %v1296_v45 }
  0xee   : > { %v618_v62 = vrot.slane %v617_v57, 2  ;;  %v628_v0 = vmul.f32 0.015625, %v615_v56 }
  0xf0   : > { %v619_v3 = vadd.f32 %v618_v62, %v617_v57  ;;  %v636_v10 = vpack.c.bf16 %v628_v0, %v628_v0  ;;  %v1290_v57 = vld [vmem:[%s1550_s9 + $0x8] sm:$0xff] }
  0xf1   : > { %908 = vmatpush.bf16.msra.mxu3 %v1285_v33  ;;  %989 = vmatpush.bf16.msrb.mxu1 %v1295_v46 }
  0xf2   : > { %v620_v8 = vrot.slane %v619_v3, 1  ;;  %v672_v18 = vunpack.c.l.b16 %v636_v10 }
  0xf4   : > { %v621_v13 = vadd.f32 %v620_v8, %v619_v3  ;;  %v685_v25 = vsel %vm684_vm7, %v672_v18, %v683_v24 }
  0xf5   : > { %909 = vmatpush.bf16.msra.mxu3 %v1284_v34  ;;  %990 = vmatpush.bf16.msrb.mxu1 %v1294_v47 }
  0xf6   : > { %v629_v17 = vmul.f32 0.015625, %v621_v13 }
  0xf8   : > { %v637_v20 = vpack.c.bf16 %v629_v17, %v629_v17 }
  0xf9   : > { %910 = vmatpush.bf16.msra.mxu3 %v1283_v35  ;;  %991 = vmatpush.bf16.msrb.mxu1 %v1293_v48 }
  0xfa   : > { %v673_v23 = vunpack.c.l.b16 %v637_v20 }
  0xfc   : > { %v687_v26 = vsel %vm686_vm8, %v673_v23, %v685_v25 }
  0xfd   : > { %v688_v27 = vpack.c.b16 %v687_v26, %v687_v26  ;;  %911 = vmatpush.bf16.msra.mxu3 %v1282_v43  ;;  %992 = vmatpush.bf16.msrb.mxu1 %v1292_v49 }
  0xff   : > { %746 = vmatmul.bf16.vlgmr.msra.gmra.mxu1 %v688_v27 }
 0x101   : > { %912 = vmatpush.bf16.msra.mxu3 %v1281_v44  ;;  %993 = vmatpush.bf16.msrb.mxu1 %v1291_v50 }
 0x105   : > { %994 = vmatpush.bf16.msrb.mxu1 %v1290_v57 }
 0x109   : > { %995 = vmatpush.bf16.msrb.mxu1 %v1289_v58 }
 0x17c   : > { %v747_v37 = vpop.f32.mrf.mxu1 }
 0x17d   : > { %v748_v39 = vadd.f32 %v1305_v36, %v747_v37 }
 0x17f   : > { %v752_v40 = vadd.f32 %v751_v38, %v748_v39 }
 0x181   : > { %v753_v41 = vpack.c.bf16 %v752_v40, %v752_v40 }
 0x183   : > { %830 = vmatmul.bf16.vlgmr.msra.gmra.mxu2 %v753_v41 }
 0x184   : > { %v749_v42 = vpop.f32.mrf.mxu1 }
 0x206   : > { %v831_v52 = vpop.f32.mrf.mxu2 }
 0x207   : > { %v832_v53 = vadd.f32 %v1306_v51, %v831_v52 }
 0x209   : > { %v835_v54 = vmax.f32 %v832_v53, 0.0 }
 0x20b   : > { %v836_v55 = vpack.c.bf16 %v835_v54, %v835_v54 }
 0x20d   : > { %913 = vmatmul.bf16.vlgmr.msra.gmra.mxu3 %v836_v55 }
 0x20e   : > { %v833_v56 = vpop.f32.mrf.mxu2 }
 0x290   : > { %v914_v60 = vpop.f32.mrf.mxu3 }
 0x291   : > { %v915_v61 = vadd.f32 %v1307_v59, %v914_v60 }
 0x293   : > { %v918_v62 = vmax.f32 %v915_v61, 0.0 }
 0x295   : > { %v919_v63 = vpack.c.bf16 %v918_v62, %v918_v62 }
 0x297   : > { %996 = vmatmul.bf16.vlgmr.msrb.gmra.mxu1 %v919_v63 }
 0x298   : > { %v916_v0 = vpop.f32.mrf.mxu3 }
 0x314   : > { %v997_v2 = vpop.f32.mrf.mxu1 }
 0x315   : > { %v998_v3 = vadd.f32 %v1308_v1, %v997_v2 }
 0x317   : > { %1001 = vst [vmem:[%s403_s16] sm:$0xff] %v998_v3 }
 0x31c   : > { %v999_v4 = vpop.f32.mrf.mxu1 }
 0x31d PF: > { %s21_s17 = sadd.s32 1, %s1315_s17  }
 0x31e   : > { %p18_p5 = scmp.ge.s32.totalorder %s21_s17, 4  }
 0x320   :  { %20 = sbr.rel (!%p18_p5) target bundleno = 1 (0x1), region = 97 }

</bundles_post_ra>
